<compile_context>
chip_gen: v7x
topology: tpu7x:2x2x1
jax: 0.10.0
libtpu: 0.0.40
codegen_flags: <defaults>
</compile_context>

<pallas_src>
import functools

import jax
import jax.numpy as jnp
from jax.experimental import pallas as pl
from jax.experimental.pallas import tpu as pltpu


def _round_up(x, m):
    return ((x + m - 1) // m) * m


def _ukd_kernel(*refs, alpha, c_old, hw, tp, has_mask, fuse_sum, approx_rcp):
    if has_mask:
        x_ref, t_ref, mask_ref, out_ref = refs
    else:
        x_ref, t_ref, out_ref = refs
        mask_ref = None

    j = pl.program_id(1)

    x = x_ref[0].astype(jnp.float32)          # (C_tot, tp) student logits
    t = t_ref[0].astype(jnp.float32)          # (C_old, tp) teacher logits

    # ---- den = logsumexp over all student classes (max-shifted). ----
    m = jnp.max(x, axis=0, keepdims=True)     # (1, tp)
    z = x - m                                 # (C_tot, tp)
    e = jnp.exp(z)
    lse = jnp.log(jnp.sum(e, axis=0, keepdims=True))   # den = m + lse

    # ---- outputs_bkg = logsumexp over {0} U [c_old, C_tot)  -  den. ----
    # Direct slice sums (the bkg set is two contiguous class ranges) with a
    # *separate* max shift so s_bkg cannot underflow to 0 -> log = -inf.
    xb0 = x[0:1]                              # (1, tp)
    xbn = x[c_old:]                           # (new_cl, tp)
    mb = jnp.maximum(xb0, jnp.max(xbn, axis=0, keepdims=True))   # (1, tp)
    s_bkg = jnp.exp(xb0 - mb) + jnp.sum(jnp.exp(xbn - mb), axis=0, keepdims=True)
    outputs_bkg = (jnp.log(s_bkg) + mb) - (lse + m)              # (1, tp)

    # ---- teacher weights: unnormalized softmax numerators. ----
    ta = t * alpha if alpha != 1.0 else t
    tm = jnp.max(ta, axis=0, keepdims=True)
    te = jnp.exp(ta - tm)                                        # (C_old, tp)
    te_sum = jnp.sum(te, axis=0, keepdims=True)                  # (1, tp) >= 1

    # ---- weighted sum over old classes, start-aligned slices only. ----
    # sum_c te[c] * (z[c] - lse) over the full [0, c_old) range, then swap the
    # c = 0 term from the plain log-softmax to outputs_bkg via a correction.
    ls_old = z[:c_old] - lse                                     # (C_old, tp)
    weighted = jnp.sum(te * ls_old, axis=0, keepdims=True)
    weighted = weighted + te[0:1] * (outputs_bkg - ls_old[0:1])

    loss = weighted * pl.reciprocal(te_sum, approx=approx_rcp) * (1.0 / c_old)

    if has_mask:
        loss = loss * mask_ref[0].astype(jnp.float32)

    # Ragged last spatial tile: zero out lanes >= HW (also kills any NaN/Inf
    # coming from the uninitialized out-of-range part of the input block).
    lane = jax.lax.broadcasted_iota(jnp.int32, (1, tp), 1)
    loss = jnp.where(j * tp + lane < hw, loss, 0.0)

    if fuse_sum:
        # Fold tp lanes into 128 lane-partials with lane-aligned (1,128) slices.
        part = loss[:, 0:128]
        for k in range(1, tp // 128):
            part = part + loss[:, k * 128:(k + 1) * 128]
        out_ref[0] = part                                        # (1, 128)
    else:
        out_ref[0] = loss                                        # (1, tp)


def _choose_tile(c_tot, c_old, hw, n, itemsize, has_mask,
                 vmem_budget_bytes=12 * 1024 * 1024, tile_cap=16384):
    """Pick the spatial (lane) tile: big enough to amortize per-step overhead,
    small enough to fit v5e's 16 MiB default scoped VMEM and to keep >= ~4
    grid steps for v7x's two TensorCores."""
    # Double-buffered input DMA + ~4 live f32 (C, tile) compute temporaries.
    bytes_per_lane = (2 * (c_tot + c_old + (1 if has_mask else 0)) * itemsize
                      + 4 * (c_tot + c_old) * 4)
    tp = int(vmem_budget_bytes // max(bytes_per_lane, 1))
    tp = (tp // 128) * 128
    tp = max(128, min(tile_cap, tp))
    # Never larger than the (128-rounded) spatial extent.
    tp = min(tp, _round_up(hw, 128))
    # Keep at least ~4 grid steps total so the v7x megacore split has work.
    min_steps = 4
    j_min = max(1, -(-min_steps // max(n, 1)))
    tp = min(tp, _round_up(-(-hw // j_min), 128))
    return max(128, tp)


def unbiased_kd_loss(inputs, targets, mask=None, *, reduction="mean",
                     alpha=1.0, tile_lanes=None, approx_reciprocal=True):
    """inputs: (N, C_tot, H, W) student logits; targets: (N, C_old, H, W)
    teacher logits (C_old < C_tot); mask: optional (N, H, W)."""
    N, C_tot, H, W = inputs.shape
    Nt, C_old, Ht, Wt = targets.shape
    assert (N, H, W) == (Nt, Ht, Wt) and C_tot > C_old
    HW = H * W
    new_cl = C_tot - C_old
    has_mask = mask is not None
    fuse_sum = reduction in ("mean", "sum")

    # Free reshapes (contiguous NCHW): class axis -> sublanes, spatial -> lanes.
    x = inputs.reshape(N, C_tot, HW)
    t = targets.reshape(N, C_old, HW)
    args = [x, t]
    if has_mask:
        if not jnp.issubdtype(mask.dtype, jnp.floating):
            mask = mask.astype(jnp.float32)
        args.append(mask.reshape(N, 1, HW))

    in_itemsize = jnp.dtype(inputs.dtype).itemsize
    t_itemsize = jnp.dtype(targets.dtype).itemsize
    if tile_lanes is None:
        tp = _choose_tile(C_tot, C_old, HW, N, max(in_itemsize, t_itemsize),
                          has_mask)
    else:
        tp = max(128, _round_up(int(tile_lanes), 128))
        tp = min(tp, _round_up(HW, 128))
    J = pl.cdiv(HW, tp)

    in_specs = [
        pl.BlockSpec((1, C_tot, tp), lambda n, j: (n, 0, j)),
        pl.BlockSpec((1, C_old, tp), lambda n, j: (n, 0, j)),
    ]
    if has_mask:
        in_specs.append(pl.BlockSpec((1, 1, tp), lambda n, j: (n, 0, j)))

    if fuse_sum:
        out_shape = jax.ShapeDtypeStruct((N, 1, J * 128), jnp.float32)
        out_spec = pl.BlockSpec((1, 1, 128), lambda n, j: (n, 0, j))
        out_bytes = N * J * 128 * 4
    else:
        out_shape = jax.ShapeDtypeStruct((N, 1, HW), jnp.float32)
        out_spec = pl.BlockSpec((1, 1, tp), lambda n, j: (n, 0, j))
        out_bytes = N * HW * 4

    mask_bytes = (N * HW * jnp.dtype(mask.dtype).itemsize) if has_mask else 0
    cost = pl.CostEstimate(
        flops=int(N * HW * (6 * C_tot + 7 * C_old + 3 * new_cl + 16)),
        transcendentals=int(N * HW * (C_tot + C_old + new_cl + 4)),
        bytes_accessed=int(N * HW * (C_tot * in_itemsize + C_old * t_itemsize)
                           + mask_bytes + out_bytes),
    )

    kernel = functools.partial(
        _ukd_kernel, alpha=float(alpha), c_old=int(C_old), hw=int(HW),
        tp=int(tp), has_mask=has_mask, fuse_sum=fuse_sum,
        approx_rcp=bool(approx_reciprocal))

    out = pl.pallas_call(
        kernel,
        out_shape=out_shape,
        grid_spec=pltpu.PrefetchScalarGridSpec(
            num_scalar_prefetch=0,
            grid=(N, J),
            in_specs=in_specs,
            out_specs=out_spec,
        ),
        compiler_params=pltpu.CompilerParams(
            dimension_semantics=("parallel", "parallel"),
            vmem_limit_bytes=32 * 1024 * 1024),
        cost_estimate=cost,
    )(*args)

    if reduction == "mean":
        return -jnp.sum(out) / (N * HW)
    if reduction == "sum":
        return -jnp.sum(out)
    return -out.reshape(N, H, W)


def _ukd_loss_ref(inputs, targets, mask=None, reduction="mean", alpha=1.0):
    """Pure-JAX reference mirroring the PyTorch module."""
    N, C_tot, H, W = inputs.shape
    C_old = targets.shape[1]
    new_cl = C_tot - C_old
    t = targets.astype(jnp.float32) * alpha
    x = inputs.astype(jnp.float32)
    den = jax.scipy.special.logsumexp(x, axis=1)
    outputs_no_bgk = x[:, 1:C_tot - new_cl] - den[:, None]
    bkg_idx = jnp.array([0] + list(range(C_old, C_tot)), dtype=jnp.int32)
    outputs_bkg = jax.scipy.special.logsumexp(x[:, bkg_idx], axis=1) - den
    labels = jax.nn.softmax(t, axis=1)
    loss = (labels[:, 0] * outputs_bkg
            + (labels[:, 1:] * outputs_no_bgk).sum(axis=1)) / C_old
    if mask is not None:
        loss = loss * mask.astype(loss.dtype)
    if reduction == "mean":
        return -jnp.mean(loss)
    if reduction == "sum":
        return -jnp.sum(loss)
    return -loss


if __name__ == "__main__":
    key = jax.random.PRNGKey(0)
    k1, k2, k3, k4, k5 = jax.random.split(key, 5)

    # Small incremental-segmentation-like shapes: 5 old classes + 3 new classes.
    N, C_old, new_cl, H, W = 2, 5, 3, 16, 16
    C_tot = C_old + new_cl

    inputs = jax.random.normal(k1, (N, C_tot, H, W), dtype=jnp.float32)
    targets = jax.random.normal(k2, (N, C_old, H, W), dtype=jnp.float32)
    mask = (jax.random.uniform(k3, (N, H, W)) > 0.2).astype(jnp.float32)

    # 1) Exact math path (no approx reciprocal), reduction='mean', no mask.
    out = unbiased_kd_loss(inputs, targets, reduction="mean",
                           approx_reciprocal=False)
    out = jax.block_until_ready(out)
    ref = _ukd_loss_ref(inputs, targets, reduction="mean")
    assert jnp.allclose(out, ref, rtol=1e-5, atol=1e-6), (out, ref)

    # 2) Fast path (approx reciprocal), reduction='mean', with fused mask.
    out_m = jax.block_until_ready(
        unbiased_kd_loss(inputs, targets, mask, reduction="mean"))
    ref_m = _ukd_loss_ref(inputs, targets, mask, reduction="mean")
    assert jnp.allclose(out_m, ref_m, rtol=1e-2, atol=1e-2), (out_m, ref_m)

    # 3) Ragged spatial extent (HW not a multiple of the lane tile), 'sum'.
    Hr, Wr = 13, 11
    xr = jax.random.normal(k4, (N, C_tot, Hr, Wr), dtype=jnp.float32)
    tr = jax.random.normal(k5, (N, C_old, Hr, Wr), dtype=jnp.float32)
    out_r = jax.block_until_ready(
        unbiased_kd_loss(xr, tr, reduction="sum", approx_reciprocal=False))
    ref_r = _ukd_loss_ref(xr, tr, reduction="sum")
    assert jnp.allclose(out_r, ref_r, rtol=1e-5, atol=1e-4), (out_r, ref_r)

    # 4) reduction='none' (per-position output path), ragged spatial extent.
    out_n = jax.block_until_ready(
        unbiased_kd_loss(xr, tr, reduction="none", approx_reciprocal=False))
    ref_n = _ukd_loss_ref(xr, tr, reduction="none")
    assert jnp.allclose(out_n, ref_n, rtol=1e-5, atol=1e-6), (
        float(jnp.abs(out_n - ref_n).max()),)

    print("KERNEL_OK")
</pallas_src>

<mosaic_0001>
module attributes {stable_mosaic.version = 11 : i64} {
  func.func @_ukd_kernel(%arg0: i32, %arg1: i32, %arg2: memref<1x8x128xf32, #tpu.memory_space<vmem>>, %arg3: memref<1x5x128xf32, #tpu.memory_space<vmem>>, %arg4: memref<1x1x128xf32, #tpu.memory_space<vmem>>) attributes {dimension_semantics = [#tpu.dimension_semantics<parallel>, #tpu.dimension_semantics<parallel>], iteration_bounds = array<i64: 2, 2>, scalar_prefetch = 0 : i64, scratch_operands = 0 : i64, tpu.core_type = #tpu.core_type<tc>, window_params = [{transform_indices = @transform_0, window_bounds = array<i64: 1, 8, 128>}, {transform_indices = @transform_1, window_bounds = array<i64: 1, 5, 128>}, {transform_indices = @transform_2, window_bounds = array<i64: 1, 1, 128>}]} {
    %c0 = arith.constant 0 : index
    %c0_0 = arith.constant 0 : index
    %c0_1 = arith.constant 0 : index
    %0 = vector.load %arg2[%c0, %c0_0, %c0_1] : memref<1x8x128xf32, #tpu.memory_space<vmem>>, vector<1x8x128xf32>
    %1 = vector.shape_cast %0 : vector<1x8x128xf32> to vector<8x128xf32>
    %c0_2 = arith.constant 0 : index
    %c0_3 = arith.constant 0 : index
    %c0_4 = arith.constant 0 : index
    %2 = vector.load %arg3[%c0_2, %c0_3, %c0_4] : memref<1x5x128xf32, #tpu.memory_space<vmem>>, vector<1x5x128xf32>
    %3 = vector.shape_cast %2 : vector<1x5x128xf32> to vector<5x128xf32>
    %cst = arith.constant dense<0xFF800000> : vector<128xf32>
    %4 = vector.multi_reduction <maximumf>, %1, %cst [0] : vector<8x128xf32> to vector<128xf32>
    %5 = vector.shape_cast %4 : vector<128xf32> to vector<1x128xf32>
    %6 = vector.broadcast %5 : vector<1x128xf32> to vector<8x128xf32>
    %7 = arith.subf %1, %6 : vector<8x128xf32>
    %8 = math.exp %7 : vector<8x128xf32>
    %cst_5 = arith.constant dense<0.000000e+00> : vector<128xf32>
    %9 = vector.multi_reduction <add>, %8, %cst_5 [0] : vector<8x128xf32> to vector<128xf32>
    %10 = vector.shape_cast %9 : vector<128xf32> to vector<1x128xf32>
    %11 = math.log %10 : vector<1x128xf32>
    %12 = vector.extract_strided_slice %1 {offsets = [0, 0], sizes = [1, 128], strides = [1, 1]} : vector<8x128xf32> to vector<1x128xf32>
    %13 = vector.extract_strided_slice %1 {offsets = [5, 0], sizes = [3, 128], strides = [1, 1]} : vector<8x128xf32> to vector<3x128xf32>
    %cst_6 = arith.constant dense<0xFF800000> : vector<128xf32>
    %14 = vector.multi_reduction <maximumf>, %13, %cst_6 [0] : vector<3x128xf32> to vector<128xf32>
    %15 = vector.shape_cast %14 : vector<128xf32> to vector<1x128xf32>
    %16 = arith.maximumf %12, %15 : vector<1x128xf32>
    %17 = arith.subf %12, %16 : vector<1x128xf32>
    %18 = math.exp %17 : vector<1x128xf32>
    %19 = vector.broadcast %16 : vector<1x128xf32> to vector<3x128xf32>
    %20 = arith.subf %13, %19 : vector<3x128xf32>
    %21 = math.exp %20 : vector<3x128xf32>
    %cst_7 = arith.constant dense<0.000000e+00> : vector<128xf32>
    %22 = vector.multi_reduction <add>, %21, %cst_7 [0] : vector<3x128xf32> to vector<128xf32>
    %23 = vector.shape_cast %22 : vector<128xf32> to vector<1x128xf32>
    %24 = arith.addf %18, %23 : vector<1x128xf32>
    %25 = math.log %24 : vector<1x128xf32>
    %26 = arith.addf %25, %16 : vector<1x128xf32>
    %27 = arith.addf %11, %5 : vector<1x128xf32>
    %28 = arith.subf %26, %27 : vector<1x128xf32>
    %cst_8 = arith.constant dense<0xFF800000> : vector<128xf32>
    %29 = vector.multi_reduction <maximumf>, %3, %cst_8 [0] : vector<5x128xf32> to vector<128xf32>
    %30 = vector.shape_cast %29 : vector<128xf32> to vector<1x128xf32>
    %31 = vector.broadcast %30 : vector<1x128xf32> to vector<5x128xf32>
    %32 = arith.subf %3, %31 : vector<5x128xf32>
    %33 = math.exp %32 : vector<5x128xf32>
    %cst_9 = arith.constant dense<0.000000e+00> : vector<128xf32>
    %34 = vector.multi_reduction <add>, %33, %cst_9 [0] : vector<5x128xf32> to vector<128xf32>
    %35 = vector.shape_cast %34 : vector<128xf32> to vector<1x128xf32>
    %36 = vector.extract_strided_slice %7 {offsets = [0, 0], sizes = [5, 128], strides = [1, 1]} : vector<8x128xf32> to vector<5x128xf32>
    %37 = vector.broadcast %11 : vector<1x128xf32> to vector<5x128xf32>
    %38 = arith.subf %36, %37 : vector<5x128xf32>
    %39 = arith.mulf %33, %38 : vector<5x128xf32>
    %cst_10 = arith.constant dense<0.000000e+00> : vector<128xf32>
    %40 = vector.multi_reduction <add>, %39, %cst_10 [0] : vector<5x128xf32> to vector<128xf32>
    %41 = vector.shape_cast %40 : vector<128xf32> to vector<1x128xf32>
    %42 = vector.extract_strided_slice %33 {offsets = [0, 0], sizes = [1, 128], strides = [1, 1]} : vector<5x128xf32> to vector<1x128xf32>
    %43 = vector.extract_strided_slice %38 {offsets = [0, 0], sizes = [1, 128], strides = [1, 1]} : vector<5x128xf32> to vector<1x128xf32>
    %44 = arith.subf %28, %43 : vector<1x128xf32>
    %45 = arith.mulf %42, %44 : vector<1x128xf32>
    %46 = arith.addf %41, %45 : vector<1x128xf32>
    %47 = tpu.reciprocal %35 : vector<1x128xf32> -> vector<1x128xf32>
    %48 = arith.mulf %46, %47 : vector<1x128xf32>
    %cst_11 = arith.constant 2.000000e-01 : f32
    %49 = vector.broadcast %cst_11 : f32 to vector<1x128xf32>
    %50 = arith.mulf %48, %49 : vector<1x128xf32>
    %51 = tpu.iota {dimensions = array<i32: 1>} : vector<1x128xi32>
    %c128_i32 = arith.constant 128 : i32
    %52 = arith.muli %arg1, %c128_i32 : i32
    %53 = vector.broadcast %52 : i32 to vector<1x128xi32>
    %54 = arith.addi %53, %51 : vector<1x128xi32>
    %c256_i32 = arith.constant 256 : i32
    %55 = vector.broadcast %c256_i32 : i32 to vector<1x128xi32>
    %56 = arith.cmpi slt, %54, %55 : vector<1x128xi32>
    %cst_12 = arith.constant 0.000000e+00 : f32
    %57 = vector.broadcast %cst_12 : f32 to vector<1x128xf32>
    %58 = arith.select %56, %50, %57 : vector<1x128xi1>, vector<1x128xf32>
    %c0_13 = arith.constant 0 : index
    %c0_14 = arith.constant 0 : index
    %c0_15 = arith.constant 0 : index
    %59 = vector.load %arg4[%c0_13, %c0_14, %c0_15] : memref<1x1x128xf32, #tpu.memory_space<vmem>>, vector<1x1x128xf32>
    %60 = vector.shape_cast %59 : vector<1x1x128xf32> to vector<1x128xf32>
    %61 = vector.shape_cast %58 : vector<1x128xf32> to vector<1x1x128xf32>
    tpu.vector_store %arg4[%c0_13, %c0_14, %c0_15], %61 {strides = array<i32>} : memref<1x1x128xf32, #tpu.memory_space<vmem>>, vector<1x1x128xf32>,
    return
  }
  func.func @transform_0(%arg0: i32, %arg1: i32) -> (i32, i32, i32) {
    %c0_i32 = arith.constant 0 : i32
    %c0_i32_0 = arith.constant 0 : i32
    return %arg0, %c0_i32, %arg1 : i32, i32, i32
  }
  func.func @transform_1(%arg0: i32, %arg1: i32) -> (i32, i32, i32) {
    %c0_i32 = arith.constant 0 : i32
    %c0_i32_0 = arith.constant 0 : i32
    return %arg0, %c0_i32, %arg1 : i32, i32, i32
  }
  func.func @transform_2(%arg0: i32, %arg1: i32) -> (i32, i32, i32) {
    %c0_i32 = arith.constant 0 : i32
    %c0_i32_0 = arith.constant 0 : i32
    return %arg0, %c0_i32, %arg1 : i32, i32, i32
  }
}

</mosaic_0001>

<bundles_post_ra>
// kernel: tpu_custom_call.1
= control target key start
LH: loop header
LB: loop body
LE: loop exit
PB: predicated region body
PF: predicated region fallthrough
CT: control target
= control target key end

     0   :  { %7 = vsyncpa [#allocation3], 0  ;;  %s757_s0 = inlined_call_operand.vmem [shape: f32[2,8,256], index: 0, kind: input, shape index: {}]   ;;  %s758_s1 = inlined_call_operand.vmem [shape: f32[2,5,256], index: 1, kind: input, shape index: {}]   ;;  %s759_s2 = inlined_call_operand.hbm [shape: f32[2,1,256], index: 2, kind: output, shape index: {}]  }
   0x1   :  { %9 = vsyncpa [#allocation3 + $0x1], 0  ;;  %s611_s9 = smov 0   ;;  %s613_s10 = smov 0  }
   0x2   :  { %s615_s11 = smov 0   ;;  %s617_s12 = smov 0  }
   0x3   :  { %s619_s13 = smov 0   ;;  %s621_s14 = smov 0  }
   0x4   :  { %s623_s15 = smov 0   ;;  %s625_s16 = smov 0  }
   0x5 LB: > { %s400_s17 = sadd.s32 4294967295, %s593_s16   ;;  %s401_s18 = sadd.s32 4294967294, %s593_s16   ;;  %s593_s16 = sphi %s625_s16, %s15_s16   ;;  %s589_s15 = sphi %s623_s15, %s768_s15   ;;  %s585_s14 = sphi %s621_s14, %s767_s14   ;;  %s581_s13 = sphi %s619_s13, %s766_s13   ;;  %s577_s12 = sphi %s617_s12, %s765_s12   ;;  %s573_s11 = sphi %s615_s11, %s764_s11   ;;  %s569_s10 = sphi %s613_s10, %s763_s10   ;;  %s565_s9 = sphi %s611_s9, %s762_s9  }
   0x6   : > { %s24_s19 = sadd.s32 1, %s585_s14  ;;  %s27_s20 = sadd.s32 1, %s589_s15 }
   0x7   : > { %p25_p0 = scmp.ge.s32.totalorder %s24_s19, 2  ;;  %p102_p1 = scmp.ne.s32.totalorder %s573_s11, %s569_s10 }
   0x8   : > { %p103_p2 = scmp.eq.s32.totalorder %s400_s17, 3  ;;  %p108_p5 = scmp.ne.s32.totalorder %s569_s10, %s565_s9 }
   0x9   : > { %s770_s19 = smov (%p25_p0, %s24_s19), 0  ;;  %s772_s20 = smov (!%p25_p0, %s27_s20), %s589_s15 }
   0xa   : > { %s88_s21 = ssub.s32 %s585_s14, %s770_s19  ;;  %p662_p3 = por %p103_p2, %p102_p1 }
   0xb   : > { %p29_p4 = scmp.ge.s32.totalorder %s772_s20, 2  ;;  %p109_p6 = scmp.eq.s32.totalorder %s401_s18, 3 }
   0xc   : > { %p404_p7 = scmp.ge.s32.totalorder %s593_s16, 1  ;;  %p149_p9 = scmp.lt.s32.totalorder %s593_s16, 5 }
   0xd   : > { %s774_s20 = smov (%p29_p4, %s772_s20), 0  ;;  %p671_p8 = por %p109_p6, %p108_p5 }
   0xe   : > { %s87_s24 = ssub.s32 %s589_s15, %s774_s20  ;;  %s92_s25 = sadd.s32 1, %s573_s11 }
   0xf   : > { %s89_s26 = sor.u32 %s88_s21, %s87_s24  ;;  %p150_p10 = pnand %p404_p7, %p149_p9 }
  0x10   : > { %p90_p11 = scmp.eq.s32.totalorder %s89_s26, 0  ;;  %p181_p12 = scmp.lt.s32.totalorder (!%p150_p10), %s581_s13, 1  ;;  %vm216_vm0 = vcmask (!%p150_p10), 1047557   ;;  %vm252_vm1 = vcmask (!%p150_p10), 1044480   ;;  %v228_v9 = vlaneseq (!%p150_p10)  ;;  %vm238_vm2 = vcmask (!%p150_p10), 1042432  }
  0x11   : > { %153 = sbr.rel (%p150_p10) target bundleno = 122 (0x7a), region = 28  ;;  %p183_p13 = scmp.lt.s32.totalorder (!%p150_p10), %s577_s12, 1 }
  0x12   : > { %s680_s27 = scalar_select %p90_p11, %s573_s11, %s92_s25  }
  0x13   : > { %v229_v16 = vshrl.u32 (!%p150_p10), %v228_v9, 7  ;;  %s409_s21 = sshll.u32 (!%p150_p10), %s577_s12, 7  ;;  %s179_s24 = sand.u32 (!%p150_p10), 1, %s569_s10  }
  0x14   : > { %s410_s25 = sshll.u32 (!%p150_p10), %s581_s13, 1  ;;  %s595_s6 = smov (!%p150_p10), [#allocation2]  }
  0x15   : > { %v230_v23 = vsub.s32 (!%p150_p10), 0, %v229_v16  ;;  %s304_s26 = sadd.s32 (!%p150_p10), %s577_s12, %s410_s25 }
  0x18   : > { %s182_s28 = scalar_select %p181_p12, %s581_s13, 1 }
  0x19   : > { %s184_s29 = scalar_select %p183_p13, %s577_s12, 1 }
  0x1a   : > { %s405_s30 = sshll.u32 %s182_s28, 1  ;;  %s180_s28 = scalar_lea.vmem [#allocation2], %s179_s24 }
  0x1b   : > { %s186_s3 = sadd.s32 %s405_s30, %s184_s29  ;;  %s308_s29 = sshll.u32 %s180_s28, 4  ;;  %s701_s29 = int_to_ptr.vmem [resolvable:$true] %s308_s29 }
  0x1c   : > { %s406_s4 = sshll.u32 %s186_s3, 3  ;;  %s411_s30 = sshll.u32 %s304_s26, 4 }
  0x1d   : > { %s188_s7 = scalar_lea.vmem %s757_s0, %s406_s4  ;;  %s196_s18 = scalar_lea.vmem %s758_s1, %s406_s4 }
  0x1e   : > { %v197_v0 = vld [vmem:[%s188_s7] sm:$0xff]  ;;  %s706_s13 = scalar_lea.hbm %s759_s2, %s411_s30  ;;  %s294_s12 = scalar_lea.sflag [#allocation3], %s179_s24 }
  0x1f   : > { %v198_v1 = vld [vmem:[%s196_s18] sm:$0x1f]  ;;  %v199_v2 = vrot.slane %v197_v0, 4  ;;  %v217_v3 = vsel %vm216_vm0, %v197_v0, -inf  ;;  %s499_s5 = scalar_lea.vmem %s701_s29, 16  ;;  %s503_s7 = sshll.u32 %s595_s6, 4  ;;  %s504_s7 = int_to_ptr.vmem [resolvable:$false] %s503_s7 }
  0x20   : > { %v253_v4 = vsel %vm252_vm1, %v198_v1, -inf  ;;  %v218_v5 = vrot.slane %v217_v3, 4  ;;  %p500_p0 = scmp.ne.s32.totalorder %s701_s29, %s499_s5  ;;  %s505_s8 = scalar_lea.vmem %s504_s7, 32 }
  0x21   : > { %v254_v6 = vrot.slane %v253_v4, 4  ;;  %v200_v7 = vmax.f32 %v197_v0, %v199_v2  ;;  %p506_p4 = scmp.lt.s32.totalorder %s701_s29, %s504_s7  ;;  %p507_p5 = scmp.lt.s32.totalorder %s505_s8, %s499_s5 }
  0x22   : > { %v219_v8 = vmax.f32 %v217_v3, %v218_v5  ;;  %p501_p1 = pnand %p500_p0, %p662_p3 }
  0x23   : > { %v255_v10 = vmax.f32 %v253_v4, %v254_v6  ;;  %v201_v11 = vrot.slane %v200_v7, 2  ;;  %p508_p6 = por %p507_p5, %p506_p4 }
  0x24   : > { %v220_v12 = vrot.slane %v219_v8, 2  ;;  %p502_p2 = pneg %p501_p1 }
  0x25   : > { %v256_v13 = vrot.slane %v255_v10, 2  ;;  %v202_v14 = vmax.f32 %v200_v7, %v201_v11 }
  0x26   : > { %v221_v15 = vmax.f32 %v219_v8, %v220_v12  ;;  %p509_p7 = pnand %p508_p6, %p502_p2 }
  0x27   : > { %v257_v17 = vmax.f32 %v255_v10, %v256_v13  ;;  %v203_v18 = vrot.slane %v202_v14, 1  ;;  %v286_v13 = vand.u32 127, %v228_v9 }
  0x28   : > { %v222_v19 = vrot.slane %v221_v15, 1 }
  0x29   : > { %v258_v20 = vrot.slane %v257_v17, 1  ;;  %v204_v21 = vmax.f32 %v202_v14, %v203_v18 }
  0x2a   : > { %v223_v22 = vmax.f32 %v221_v15, %v222_v19  ;;  %v288_v15 = vstv %s409_s21 }
  0x2b   : > { %v259_v24 = vmax.f32 %v257_v17, %v258_v20  ;;  %v205_v25 = vsub.f32 %v197_v0, %v204_v21  ;;  %v289_v19 = vadd.s32 %v288_v15, %v286_v13 }
  0x2c   : > { %v224_v26 = vmax.f32 %v197_v0, %v223_v22 }
  0x2d   : > { %v260_v27 = vsub.f32 %v198_v1, %v259_v24  ;;  %v206_v28 = vmul.f32 1.442695, %v205_v25  ;;  %vm290_vm3 = vcmp.lt.s32.totalorder %v289_v19, 256 }
  0x2e   : > { %v231_v29 = vrot.slane %v224_v26, %v230_v23  ;;  %v225_v34 = vsub.f32 %v197_v0, %v224_v26 }
  0x2f   : > { %v261_v30 = vmul.f32 1.442695, %v260_v27  ;;  %485 = vpow2.f32 %v206_v28 }
  0x30   : > { %v232_v31 = vsub.f32 %v197_v0, %v231_v29  ;;  %v226_v38 = vmul.f32 1.442695, %v225_v34 }
  0x31   : > { %487 = vpow2.f32 %v261_v30 }
  0x32   : > { %v233_v32 = vmul.f32 1.442695, %v232_v31 }
  0x34   : > { %489 = vpow2.f32 %v233_v32 }
  0x35   : > { %491 = vpow2.f32 %v226_v38 }
  0x39   : > { %v486_v33 = vpop.eup %485 }
  0x3a   : > { %v208_v35 = vrot.slane %v486_v33, 4 }
  0x3b   : > { %v488_v36 = vpop.eup %487 }
  0x3c   : > { %v209_v37 = vadd.f32 %v486_v33, %v208_v35  ;;  %v263_v42 = vsel %vm252_vm1, %v488_v36, 0.0 }
  0x3d   : > { %v264_v47 = vrot.slane %v263_v42, 4 }
  0x3e   : > { %v490_v39 = vpop.eup %489  ;;  %v210_v40 = vrot.slane %v209_v37, 2 }
  0x3f   : > { %v236_v41 = vrot.slane %v490_v39, 5  ;;  %v265_v51 = vadd.f32 %v264_v47, %v263_v42  ;;  %v492_v55 = vpop.eup %491 }
  0x40   : > { %v211_v43 = vadd.f32 %v210_v40, %v209_v37 }
  0x41   : > { %v239_v44 = vsel %vm238_vm2, %v236_v41, 0.0  ;;  %v266_v54 = vrot.slane %v265_v51, 2 }
  0x42   : > { %v212_v45 = vrot.slane %v211_v43, 1  ;;  %v240_v46 = vrot.slane %v239_v44, 4 }
  0x43   : > { %v267_v58 = vadd.f32 %v266_v54, %v265_v51 }
  0x44   : > { %v213_v48 = vadd.f32 %v212_v45, %v211_v43  ;;  %v241_v49 = vadd.f32 %v240_v46, %v239_v44 }
  0x45   : > { %v268_v61 = vrot.slane %v267_v58, 1 }
  0x46   : > { %493 = vlog2.f32 %v213_v48  ;;  %v242_v50 = vrot.slane %v241_v49, 2 }
  0x47   : > { %v269_v0 = vadd.f32 %v268_v61, %v267_v58 }
  0x48   : > { %v243_v52 = vadd.f32 %v242_v50, %v241_v49 }
  0x4a   : > { %v244_v53 = vrot.slane %v243_v52, 1 }
  0x4c   : > { %v245_v56 = vadd.f32 %v244_v53, %v243_v52 }
  0x4e   : > { %v246_v57 = vadd.f32 %v492_v55, %v245_v56 }
  0x50   : > { %v494_v59 = vpop.eup %493  ;;  %495 = vlog2.f32 %v246_v57 }
  0x51   : > { %v215_v60 = vmul.f32 0.6931472, %v494_v59  ;;  %497 = vrcp.f32 %v269_v0 }
  0x53   : > { %v270_v62 = vsub.f32 %v205_v25, %v215_v60  ;;  %v250_v6 = vadd.f32 %v215_v60, %v204_v21 }
  0x55   : > { %v271_v63 = vmul.f32 %v488_v36, %v270_v62 }
  0x57   : > { %v272_v1 = vsel %vm252_vm1, %v271_v63, 0.0 }
  0x58   : > { %v273_v2 = vrot.slane %v272_v1, 4 }
  0x5a   : > { %v496_v3 = vpop.eup %495  ;;  %v274_v4 = vadd.f32 %v273_v2, %v272_v1 }
  0x5b   : > { %v248_v5 = vmul.f32 0.6931472, %v496_v3  ;;  %v498_v18 = vpop.eup %497 }
  0x5c   : > { %v275_v7 = vrot.slane %v274_v4, 2 }
  0x5d   : > { %v249_v8 = vadd.f32 %v248_v5, %v224_v26 }
  0x5e   : > { %v276_v10 = vadd.f32 %v275_v7, %v274_v4 }
  0x5f   : > { %v251_v11 = vsub.f32 %v249_v8, %v250_v6 }
  0x60   : > { %v277_v12 = vrot.slane %v276_v10, 1 }
  0x61   : > { %v279_v14 = vsub.f32 %v251_v11, %v270_v62 }
  0x62   : > { %v278_v16 = vadd.f32 %v277_v12, %v276_v10 }
  0x63   : > { %v280_v17 = vmul.f32 %v488_v36, %v279_v14 }
  0x65   : > { %v281_v20 = vadd.f32 %v280_v17, %v278_v16 }
  0x67   : > { %v283_v21 = vmul.f32 %v498_v18, %v281_v20 }
  0x69   : > { %v284_v22 = vmul.f32 0.2, %v283_v21 }
  0x6b   : > { %v291_v9 = vsel %vm290_vm3, %v284_v22, 0.0 }
  0x6c   : > { %292 = vst [vmem:[%s180_s28] sm:$0x1] %v291_v9 }
  0x6d   : > { %512 = shalt.err (!%p509_p7)
}
  0x6e   : > { %s513_s17 = scalar_lea.hbm %s706_s13, 16  ;;  %s517_s24 = scalar_lea.hbm %s759_s2, 64 }
  0x6f   : > { %p514_p9 = scmp.ne.s32.totalorder %s706_s13, %s513_s17  ;;  %p518_p12 = scmp.lt.u32.totalorder %s706_s13, %s759_s2 }
  0x70   : > { %p519_p13 = scmp.lt.u32.totalorder %s517_s24, %s513_s17  ;;  %p521_p1 = scmp.lt.u32.totalorder %s513_s17, %s706_s13 }
  0x71   : > { %p515_p10 = pnand %p514_p9, %p662_p3 }
  0x72   : > { %p520_p0 = por %p519_p13, %p518_p12 }
  0x73   : > { %p516_p11 = pneg %p515_p10 }
  0x74   : > { %p522_p2 = por %p521_p1, %p520_p0 }
  0x76   : > { %p523_p4 = pnand %p522_p2, %p516_p11 }
  0x78   : > { %526 = shalt.err (!%p523_p4)
}
  0x79   : > { %414 = dma.vmem_to_hbm [thread:$0]  (%p662_p3), %s701_s29, 16, %s706_s13, %s294_s12  }
  0x7a PF: > { %p420_p5 = scmp.ge.s32.totalorder %s593_s16, 2  ;;  %s320_s28 = sand.u32 1, %s565_s9  }
  0x7b   : > { %s321_s30 = scalar_lea.sflag [#allocation3], %s320_s28 }
  0x7c   : > { %p417_p6 = pnand %p420_p5, %p671_p8 }
  0x7e   : > { %560 = dma.done.wait (!%p417_p6), %s321_s30, 16  }
  0x7f   : > { %562 = vsyncadd (!%p417_p6), %s321_s30, 4294967280  ;;  %s15_s16 = sadd.s32 1, %s593_s16   ;;  %s762_s9 = smov %s569_s10 }
  0x80   : > { %p12_p7 = scmp.ge.s32.totalorder %s15_s16, 6   ;;  %s763_s10 = smov %s573_s11 }
  0x81   : > { %s764_s11 = smov %s680_s27  ;;  %s765_s12 = smov %s585_s14 }
  0x82   : > { %s766_s13 = smov %s589_s15  ;;  %s767_s14 = smov %s770_s19 }
  0x83   : > { %s768_s15 = smov %s774_s20  ;;  %14 = sbr.rel (!%p12_p7) target bundleno = 5 (0x5), region = 66 }
  0x8a   :  { %325 = vsyncpa [#allocation3], 1 }
  0x8b   :  { %327 = vsyncpa [#allocation3 + $0x1], 1 }

</bundles_post_ra>
